<compile_context>
chip_gen: v7x
topology: tpu7x:2x2x1
jax: 0.10.0
libtpu: 0.0.40
codegen_flags: <defaults>
</compile_context>

<pallas_src>
import functools

import jax
import jax.numpy as jnp
from jax.experimental import pallas as pl
from jax.experimental.pallas import tpu as pltpu

OUT_W = 128  # lane-dense output slab width


def ppo_fused_kernel(low_ref, soc_ref,
                     w1l_ref, w1s_ref, b1_ref,
                     w2_ref, b2_ref,
                     w3_ref, b3_ref,
                     out_ref):
    # ---- Layer 1 (critic+actor fused): x @ W1 + b1, W1 split row-wise over inputs ----
    y = (jnp.dot(low_ref[...], w1l_ref[...], preferred_element_type=jnp.float32)
         + jnp.dot(soc_ref[...], w1s_ref[...], preferred_element_type=jnp.float32)
         + b1_ref[...])
    y = jnp.maximum(y, 0.0)

    # ---- Layer 2 (block-diagonal: critic half / actor half stay independent) ----
    y = jnp.dot(y, w2_ref[...], preferred_element_type=jnp.float32) + b2_ref[...]
    y = jnp.maximum(y, 0.0)

    # ---- Layer 3 (block-diagonal, zero-padded to 128 lanes) ----
    z = jnp.dot(y, w3_ref[...], preferred_element_type=jnp.float32) + b3_ref[...]

    # col 0 = value (no tanh); cols >= 1 = actor logits -> tanh (tanh(0)=0 on padding).
    col = jax.lax.broadcasted_iota(jnp.int32, z.shape, dimension=1)
    out_ref[...] = jnp.where(col == 0, z, jnp.tanh(z)).astype(out_ref.dtype)


def init_linear(key, fan_in, fan_out):
    """Deterministic PyTorch-style nn.Linear init: U(-1/sqrt(fan_in), 1/sqrt(fan_in))."""
    kw, kb = jax.random.split(key)
    bound = 1.0 / jnp.sqrt(jnp.float32(fan_in))
    w = jax.random.uniform(kw, (fan_in, fan_out), jnp.float32, -bound, bound)
    b = jax.random.uniform(kb, (1, fan_out), jnp.float32, -bound, bound)
    return w, b


def make_params(key, state_size, hidden_units, action_size):
    keys = jax.random.split(key, 6)
    # critic: state_size -> H -> H -> 1
    cw1, cb1 = init_linear(keys[0], state_size, hidden_units)
    cw2, cb2 = init_linear(keys[1], hidden_units, hidden_units)
    cw3, cb3 = init_linear(keys[2], hidden_units, 1)
    # actor: state_size -> H -> H -> action_size
    aw1, ab1 = init_linear(keys[3], state_size, hidden_units)
    aw2, ab2 = init_linear(keys[4], hidden_units, hidden_units)
    aw3, ab3 = init_linear(keys[5], hidden_units, action_size)
    return (cw1, cb1, cw2, cb2, cw3, cb3, aw1, ab1, aw2, ab2, aw3, ab3)


def fuse_params(params, low_dim_size, out_width=OUT_W):
    """Fuse critic/actor weights into shared wide matmul weights (done once, off the hot path)."""
    (cw1, cb1, cw2, cb2, cw3, cb3, aw1, ab1, aw2, ab2, aw3, ab3) = params
    H = cw1.shape[1]
    A = aw3.shape[1]

    # Layer 1: concat along output axis, then split row-wise (low-dim rows / social rows).
    w1 = jnp.concatenate([cw1, aw1], axis=1)              # (S, 2H)
    w1_low = w1[:low_dim_size]                            # (LOW_DIM, 2H)
    w1_soc = w1[low_dim_size:]                            # (SOC, 2H)
    b1 = jnp.concatenate([cb1, ab1], axis=1)              # (1, 2H)

    # Layer 2: block-diagonal so the two heads stay independent.
    w2 = jnp.zeros((2 * H, 2 * H), jnp.float32)
    w2 = w2.at[:H, :H].set(cw2).at[H:, H:].set(aw2)       # (2H, 2H)
    b2 = jnp.concatenate([cb2, ab2], axis=1)              # (1, 2H)

    # Layer 3: block-diagonal, zero-padded to a lane-dense width.
    w3 = jnp.zeros((2 * H, out_width), jnp.float32)
    w3 = w3.at[:H, 0:1].set(cw3).at[H:, 1:1 + A].set(aw3)  # (2H, 128)
    b3 = jnp.zeros((1, out_width), jnp.float32)
    b3 = b3.at[:, 0:1].set(cb3).at[:, 1:1 + A].set(ab3)    # (1, 128)

    return (w1_low, w1_soc, b1, w2, b2, w3, b3)


@functools.partial(jax.jit, static_argnames=("action_size",))
def ppo_forward(low_dim_states, social_vehicles, fused_params, action_size):
    """Inference-mode PPONetwork.forward: returns ((mu, std) = Normal dist params, value)."""
    B = low_dim_states.shape[0]
    # social_feature = cat([e.reshape(1, -1) for e in social_vehicles], 0)
    # -> row-major flatten; layout-preserving reshape, no HBM concat of the state.
    soc_flat = social_vehicles.reshape(B, -1)

    # Batch tiling: grid-less (single step) for tiny B, 256-row tiles for large B.
    if B >= 256:
        TB = 256
    else:
        TB = B
    B_pad = ((B + TB - 1) // TB) * TB
    if B_pad != B:
        pad = B_pad - B
        low_dim_states = jnp.pad(low_dim_states, ((0, pad), (0, 0)))
        soc_flat = jnp.pad(soc_flat, ((0, pad), (0, 0)))
    grid = (B_pad // TB,)

    low_spec = pl.BlockSpec((TB, low_dim_states.shape[1]), lambda i: (i, 0))
    soc_spec = pl.BlockSpec((TB, soc_flat.shape[1]), lambda i: (i, 0))
    # Weights/biases: full arrays, constant index_map -> stay resident in VMEM.
    weight_specs = [pl.BlockSpec(p.shape, lambda i: (0, 0)) for p in fused_params]
    out_spec = pl.BlockSpec((TB, OUT_W), lambda i: (i, 0))

    out = pl.pallas_call(
        ppo_fused_kernel,
        out_shape=jax.ShapeDtypeStruct((B_pad, OUT_W), jnp.float32),
        grid=grid,
        in_specs=[low_spec, soc_spec] + weight_specs,
        out_specs=out_spec,
        compiler_params=pltpu.CompilerParams(
            dimension_semantics=("parallel",)),  # shards the batch grid across v7x's 2 TCs
    )(low_dim_states, soc_flat, *fused_params)

    value = out[:B, 0:1]
    mu = out[:B, 1:1 + action_size]
    # std is a compile-time constant (0.5); produced in the wrapper, not DMA'd from VMEM.
    std = jnp.full((B, action_size), 0.5, jnp.float32)
    return (mu, std), value


def reference_forward(low_dim_states, social_vehicles, params):
    (cw1, cb1, cw2, cb2, cw3, cb3, aw1, ab1, aw2, ab2, aw3, ab3) = params
    B = low_dim_states.shape[0]
    x = jnp.concatenate([low_dim_states, social_vehicles.reshape(B, -1)], axis=-1)
    h = jnp.maximum(x @ cw1 + cb1, 0.0)
    h = jnp.maximum(h @ cw2 + cb2, 0.0)
    value = h @ cw3 + cb3
    a = jnp.maximum(x @ aw1 + ab1, 0.0)
    a = jnp.maximum(a @ aw2 + ab2, 0.0)
    mu = jnp.tanh(a @ aw3 + ab3)
    std = jnp.ones_like(mu) * 0.5
    return (mu, std), value


if __name__ == "__main__":
    # Small shapes consistent with the module's forward.
    B = 4            # batch
    LOW_DIM = 8      # low_dim_states feature size
    N_SOCIAL = 5     # number of social vehicles
    SOC_FEAT = 4     # per-vehicle feature size
    STATE_SIZE = LOW_DIM + N_SOCIAL * SOC_FEAT   # 28
    HIDDEN = 32
    ACTION_SIZE = 2

    key = jax.random.PRNGKey(0)
    k_low, k_soc, k_params = jax.random.split(key, 3)

    low_dim_states = jax.random.normal(k_low, (B, LOW_DIM), jnp.float32)
    social_vehicles = jax.random.normal(k_soc, (B, N_SOCIAL, SOC_FEAT), jnp.float32)
    params = make_params(k_params, STATE_SIZE, HIDDEN, ACTION_SIZE)
    fused = fuse_params(params, LOW_DIM)

    (mu, std), value = ppo_forward(low_dim_states, social_vehicles, fused, ACTION_SIZE)
    jax.block_until_ready((mu, std, value))

    # Check against pure-JAX reference.
    (mu_ref, std_ref), value_ref = reference_forward(low_dim_states, social_vehicles, params)
    assert mu.shape == (B, ACTION_SIZE) and std.shape == (B, ACTION_SIZE) and value.shape == (B, 1)
    assert jnp.allclose(mu, mu_ref, atol=1e-5), "mu mismatch"
    assert jnp.allclose(std, std_ref, atol=1e-6), "std mismatch"
    assert jnp.allclose(value, value_ref, atol=1e-5), "value mismatch"

    # TODO(synk): the Normal distribution object itself (sampling / log_prob) has no
    # Pallas equivalent; the kernel returns its parameters (mu, std) instead.
    print("KERNEL_OK")
</pallas_src>

<mosaic_0001>
module attributes {stable_mosaic.version = 11 : i64} {
  func.func @ppo_fused_kernel(%arg0: i32, %arg1: memref<4x8xf32, #tpu.memory_space<vmem>>, %arg2: memref<4x20xf32, #tpu.memory_space<vmem>>, %arg3: memref<8x64xf32, #tpu.memory_space<vmem>>, %arg4: memref<20x64xf32, #tpu.memory_space<vmem>>, %arg5: memref<1x64xf32, #tpu.memory_space<vmem>>, %arg6: memref<64x64xf32, #tpu.memory_space<vmem>>, %arg7: memref<1x64xf32, #tpu.memory_space<vmem>>, %arg8: memref<64x128xf32, #tpu.memory_space<vmem>>, %arg9: memref<1x128xf32, #tpu.memory_space<vmem>>, %arg10: memref<4x128xf32, #tpu.memory_space<vmem>>) attributes {dimension_semantics = [#tpu.dimension_semantics<parallel>], iteration_bounds = array<i64: 1>, scalar_prefetch = 0 : i64, scratch_operands = 0 : i64, tpu.core_type = #tpu.core_type<tc>, window_params = [{transform_indices = @transform_0, window_bounds = array<i64: 4, 8>}, {transform_indices = @transform_1, window_bounds = array<i64: 4, 20>}, {pipeline_mode = #tpu.pipeline_mode<synchronous>, transform_indices = @transform_2, window_bounds = array<i64: 8, 64>}, {pipeline_mode = #tpu.pipeline_mode<synchronous>, transform_indices = @transform_3, window_bounds = array<i64: 20, 64>}, {pipeline_mode = #tpu.pipeline_mode<synchronous>, transform_indices = @transform_4, window_bounds = array<i64: 1, 64>}, {pipeline_mode = #tpu.pipeline_mode<synchronous>, transform_indices = @transform_5, window_bounds = array<i64: 64, 64>}, {pipeline_mode = #tpu.pipeline_mode<synchronous>, transform_indices = @transform_6, window_bounds = array<i64: 1, 64>}, {pipeline_mode = #tpu.pipeline_mode<synchronous>, transform_indices = @transform_7, window_bounds = array<i64: 64, 128>}, {pipeline_mode = #tpu.pipeline_mode<synchronous>, transform_indices = @transform_8, window_bounds = array<i64: 1, 128>}, {transform_indices = @transform_9, window_bounds = array<i64: 4, 128>}]} {
    %c0 = arith.constant 0 : index
    %c0_0 = arith.constant 0 : index
    %0 = vector.load %arg1[%c0, %c0_0] : memref<4x8xf32, #tpu.memory_space<vmem>>, vector<4x8xf32>
    %c0_1 = arith.constant 0 : index
    %c0_2 = arith.constant 0 : index
    %1 = vector.load %arg3[%c0_1, %c0_2] : memref<8x64xf32, #tpu.memory_space<vmem>>, vector<8x64xf32>
    %cst = arith.constant dense<0.000000e+00> : vector<4x64xf32>
    %2 = tpu.matmul %0, %1, %cst {dimension_numbers = #tpu.dot_dimension_numbers<[1], [0], [0], [1], [0, 0, 1, 1], [], []>} : vector<4x8xf32>, vector<8x64xf32>, vector<4x64xf32> -> vector<4x64xf32>
    %c0_3 = arith.constant 0 : index
    %c0_4 = arith.constant 0 : index
    %3 = vector.load %arg2[%c0_3, %c0_4] : memref<4x20xf32, #tpu.memory_space<vmem>>, vector<4x20xf32>
    %c0_5 = arith.constant 0 : index
    %c0_6 = arith.constant 0 : index
    %4 = vector.load %arg4[%c0_5, %c0_6] : memref<20x64xf32, #tpu.memory_space<vmem>>, vector<20x64xf32>
    %cst_7 = arith.constant dense<0.000000e+00> : vector<4x64xf32>
    %5 = tpu.matmul %3, %4, %cst_7 {dimension_numbers = #tpu.dot_dimension_numbers<[1], [0], [0], [1], [0, 0, 1, 1], [], []>} : vector<4x20xf32>, vector<20x64xf32>, vector<4x64xf32> -> vector<4x64xf32>
    %6 = arith.addf %2, %5 : vector<4x64xf32>
    %c0_8 = arith.constant 0 : index
    %c0_9 = arith.constant 0 : index
    %7 = vector.load %arg5[%c0_8, %c0_9] : memref<1x64xf32, #tpu.memory_space<vmem>>, vector<1x64xf32>
    %8 = vector.broadcast %7 : vector<1x64xf32> to vector<4x64xf32>
    %9 = arith.addf %6, %8 : vector<4x64xf32>
    %cst_10 = arith.constant 0.000000e+00 : f32
    %10 = vector.broadcast %cst_10 : f32 to vector<4x64xf32>
    %11 = arith.maximumf %9, %10 : vector<4x64xf32>
    %c0_11 = arith.constant 0 : index
    %c0_12 = arith.constant 0 : index
    %12 = vector.load %arg6[%c0_11, %c0_12] : memref<64x64xf32, #tpu.memory_space<vmem>>, vector<64x64xf32>
    %cst_13 = arith.constant dense<0.000000e+00> : vector<4x64xf32>
    %13 = tpu.matmul %11, %12, %cst_13 {dimension_numbers = #tpu.dot_dimension_numbers<[1], [0], [0], [1], [0, 0, 1, 1], [], []>} : vector<4x64xf32>, vector<64x64xf32>, vector<4x64xf32> -> vector<4x64xf32>
    %c0_14 = arith.constant 0 : index
    %c0_15 = arith.constant 0 : index
    %14 = vector.load %arg7[%c0_14, %c0_15] : memref<1x64xf32, #tpu.memory_space<vmem>>, vector<1x64xf32>
    %15 = vector.broadcast %14 : vector<1x64xf32> to vector<4x64xf32>
    %16 = arith.addf %13, %15 : vector<4x64xf32>
    %cst_16 = arith.constant 0.000000e+00 : f32
    %17 = vector.broadcast %cst_16 : f32 to vector<4x64xf32>
    %18 = arith.maximumf %16, %17 : vector<4x64xf32>
    %c0_17 = arith.constant 0 : index
    %c0_18 = arith.constant 0 : index
    %19 = vector.load %arg8[%c0_17, %c0_18] : memref<64x128xf32, #tpu.memory_space<vmem>>, vector<64x128xf32>
    %cst_19 = arith.constant dense<0.000000e+00> : vector<4x128xf32>
    %20 = tpu.matmul %18, %19, %cst_19 {dimension_numbers = #tpu.dot_dimension_numbers<[1], [0], [0], [1], [0, 0, 1, 1], [], []>} : vector<4x64xf32>, vector<64x128xf32>, vector<4x128xf32> -> vector<4x128xf32>
    %c0_20 = arith.constant 0 : index
    %c0_21 = arith.constant 0 : index
    %21 = vector.load %arg9[%c0_20, %c0_21] : memref<1x128xf32, #tpu.memory_space<vmem>>, vector<1x128xf32>
    %22 = vector.broadcast %21 : vector<1x128xf32> to vector<4x128xf32>
    %23 = arith.addf %20, %22 : vector<4x128xf32>
    %24 = tpu.iota {dimensions = array<i32: 1>} : vector<4x128xi32>
    %c0_i32 = arith.constant 0 : i32
    %25 = vector.broadcast %c0_i32 : i32 to vector<4x128xi32>
    %26 = arith.cmpi eq, %24, %25 : vector<4x128xi32>
    %27 = math.tanh %23 : vector<4x128xf32>
    %28 = arith.select %26, %23, %27 : vector<4x128xi1>, vector<4x128xf32>
    %c0_22 = arith.constant 0 : index
    %c0_23 = arith.constant 0 : index
    %29 = vector.load %arg10[%c0_22, %c0_23] : memref<4x128xf32, #tpu.memory_space<vmem>>, vector<4x128xf32>
    tpu.vector_store %arg10[%c0_22, %c0_23], %28 {strides = array<i32>} : memref<4x128xf32, #tpu.memory_space<vmem>>, vector<4x128xf32>,
    return
  }
  func.func @transform_0(%arg0: i32) -> (i32, i32) {
    %c0_i32 = arith.constant 0 : i32
    %c0_i32_0 = arith.constant 0 : i32
    return %arg0, %c0_i32 : i32, i32
  }
  func.func @transform_1(%arg0: i32) -> (i32, i32) {
    %c0_i32 = arith.constant 0 : i32
    %c0_i32_0 = arith.constant 0 : i32
    return %arg0, %c0_i32 : i32, i32
  }
  func.func @transform_2(%arg0: i32) -> (i32, i32) {
    %c0_i32 = arith.constant 0 : i32
    %c0_i32_0 = arith.constant 0 : i32
    %c0_i32_1 = arith.constant 0 : i32
    return %c0_i32, %c0_i32_0 : i32, i32
  }
  func.func @transform_3(%arg0: i32) -> (i32, i32) {
    %c0_i32 = arith.constant 0 : i32
    %c0_i32_0 = arith.constant 0 : i32
    %c0_i32_1 = arith.constant 0 : i32
    return %c0_i32, %c0_i32_0 : i32, i32
  }
  func.func @transform_4(%arg0: i32) -> (i32, i32) {
    %c0_i32 = arith.constant 0 : i32
    %c0_i32_0 = arith.constant 0 : i32
    %c0_i32_1 = arith.constant 0 : i32
    return %c0_i32, %c0_i32_0 : i32, i32
  }
  func.func @transform_5(%arg0: i32) -> (i32, i32) {
    %c0_i32 = arith.constant 0 : i32
    %c0_i32_0 = arith.constant 0 : i32
    %c0_i32_1 = arith.constant 0 : i32
    return %c0_i32, %c0_i32_0 : i32, i32
  }
  func.func @transform_6(%arg0: i32) -> (i32, i32) {
    %c0_i32 = arith.constant 0 : i32
    %c0_i32_0 = arith.constant 0 : i32
    %c0_i32_1 = arith.constant 0 : i32
    return %c0_i32, %c0_i32_0 : i32, i32
  }
  func.func @transform_7(%arg0: i32) -> (i32, i32) {
    %c0_i32 = arith.constant 0 : i32
    %c0_i32_0 = arith.constant 0 : i32
    %c0_i32_1 = arith.constant 0 : i32
    return %c0_i32, %c0_i32_0 : i32, i32
  }
  func.func @transform_8(%arg0: i32) -> (i32, i32) {
    %c0_i32 = arith.constant 0 : i32
    %c0_i32_0 = arith.constant 0 : i32
    %c0_i32_1 = arith.constant 0 : i32
    return %c0_i32, %c0_i32_0 : i32, i32
  }
  func.func @transform_9(%arg0: i32) -> (i32, i32) {
    %c0_i32 = arith.constant 0 : i32
    %c0_i32_0 = arith.constant 0 : i32
    return %arg0, %c0_i32 : i32, i32
  }
}

</mosaic_0001>

<bundles_post_ra>
// kernel: ppo_forward.1
= control target key start
LH: loop header
LB: loop body
LE: loop exit
PB: predicated region body
PF: predicated region fallthrough
CT: control target
= control target key end

     0   :  { %14 = vsyncpa [#allocation3], 0  ;;  %s763_s0 = inlined_call_operand.hbm [shape: f32[4,8], index: 0, kind: input, shape index: {}]   ;;  %s764_s1 = inlined_call_operand.vmem [shape: f32[4,20], index: 1, kind: input, shape index: {}]   ;;  %s765_s2 = inlined_call_operand.vmem [shape: f32[8,64], index: 2, kind: input, shape index: {}]   ;;  %s766_s3 = inlined_call_operand.vmem [shape: f32[20,64], index: 3, kind: input, shape index: {}]   ;;  %s767_s4 = inlined_call_operand.vmem [shape: f32[1,64], index: 4, kind: input, shape index: {}]   ;;  %s768_s5 = inlined_call_operand.vmem [shape: f32[64,64], index: 5, kind: input, shape index: {}]   ;;  %s769_s6 = inlined_call_operand.vmem [shape: f32[1,64], index: 6, kind: input, shape index: {}]   ;;  %s770_s7 = inlined_call_operand.hbm [shape: f32[64,128], index: 7, kind: input, shape index: {}]   ;;  %s771_s8 = inlined_call_operand.hbm [shape: f32[1,128], index: 8, kind: input, shape index: {}]   ;;  %s772_s9 = inlined_call_operand.vmem [shape: f32[4,128], index: 9, kind: output, shape index: {}]  }
   0x1   :  { %15 = vsyncpa [#allocation5], 0  ;;  %s617_s30 = smov [#allocation4]   ;;  %s547_s13 = scalar_lea.hbm %s770_s7, 1024 }
   0x2   :  { %s43_s10 = sshll.u32 %s617_s30, 4  ;;  %p548_p0 = scmp.ne.s32.totalorder %s770_s7, %s547_s13  ;;  %s44_s10 = int_to_ptr.vmem [resolvable:$true] %s43_s10 }
   0x3   :  { %p551_p1 = scmp.lt.u32.totalorder %s547_s13, %s770_s7 }
   0x5   :  { %p553_p2 = pnand %p551_p1, %p548_p0 }
   0x7   :  { %556 = shalt.err (!%p553_p2)
}
   0x8   :  { %s557_s18 = scalar_lea.vmem %s44_s10, 1024  ;;  %p562_p4 = scmp.lt.s32.totalorder %s44_s10, %s44_s10 }
   0x9   :  { %p558_p3 = scmp.ne.s32.totalorder %s44_s10, %s557_s18  ;;  %p563_p5 = scmp.lt.s32.totalorder %s557_s18, %s557_s18 }
   0xb   :  { %p564_p6 = por %p563_p5, %p562_p4 }
   0xd   :  { %p565_p7 = pnand %p564_p6, %p558_p3 }
   0xf   :  { %568 = shalt.err (!%p565_p7)
}
  0x10   :  { %s618_s19 = smov 128   ;;  %s619_s20 = smov 8  }
  0x11   :  { %49 = dma.hbm_to_vmem [thread:$0]  %s770_s7, 1024, %s44_s10, [#allocation5], %s618_s19, %s618_s19, %s619_s20  }
  0x12   :  { %s620_s23 = smov [#allocation2]   ;;  %s621_s25 = smov [#allocation6]  }
  0x13   :  { %s22_s24 = sshll.u32 %s620_s23, 4  ;;  %s56_s26 = sshll.u32 %s621_s25, 4  ;;  %s23_s24 = int_to_ptr.vmem [resolvable:$true] %s22_s24  ;;  %s57_s26 = int_to_ptr.vmem [resolvable:$true] %s56_s26 }
  0x14   :  { %s569_s29 = scalar_lea.hbm %s763_s0, 64 }
  0x15   :  { %p570_p8 = scmp.ne.s32.totalorder %s763_s0, %s569_s29  ;;  %p573_p9 = scmp.lt.u32.totalorder %s569_s29, %s763_s0 }
  0x17   :  { %p575_p10 = pnand %p573_p9, %p570_p8 }
  0x19   :  { %578 = shalt.err (!%p575_p10)
}
  0x1a   :  { %s579_s7 = scalar_lea.vmem %s23_s24, 64  ;;  %p584_p12 = scmp.lt.s32.totalorder %s23_s24, %s23_s24 }
  0x1b   :  { %p580_p11 = scmp.ne.s32.totalorder %s23_s24, %s579_s7  ;;  %p585_p13 = scmp.lt.s32.totalorder %s579_s7, %s579_s7 }
  0x1d   :  { %p586_p0 = por %p585_p13, %p584_p12 }
  0x1f   :  { %p587_p1 = pnand %p586_p0, %p580_p11 }
  0x21   :  { %590 = shalt.err (!%p587_p1)
}
  0x22   :  { %25 = dma.hbm_to_vmem [thread:$0]  %s763_s0, 64, %s23_s24, [#allocation3]  }
  0x23   :  { %s591_s17 = scalar_lea.hbm %s771_s8, 16 }
  0x24   :  { %p592_p2 = scmp.ne.s32.totalorder %s771_s8, %s591_s17  ;;  %p595_p3 = scmp.lt.u32.totalorder %s591_s17, %s771_s8 }
  0x26   :  { %p597_p4 = pnand %p595_p3, %p592_p2 }
  0x28   :  { %600 = shalt.err (!%p597_p4)
}
  0x29   :  { %s601_s22 = scalar_lea.vmem %s57_s26, 16  ;;  %s605_s23 = scalar_lea.vmem %s57_s26, 32 }
  0x2a   :  { %p602_p5 = scmp.ne.s32.totalorder %s57_s26, %s601_s22  ;;  %p606_p6 = scmp.lt.s32.totalorder %s57_s26, %s57_s26 }
  0x2b   :  { %p607_p7 = scmp.lt.s32.totalorder %s605_s23, %s601_s22 }
  0x2d   :  { %p608_p8 = por %p607_p7, %p606_p6 }
  0x2f   :  { %p609_p9 = pnand %p608_p8, %p602_p5 }
  0x31   :  { %612 = shalt.err (!%p609_p9)
}
  0x32   :  { %59 = dma.hbm_to_vmem [thread:$0]  %s771_s8, 16, %s57_s26, [#allocation5]  }
  0x33   :  { %613 = dma.done.wait [#allocation3], 64  }
  0x34   :  { %614 = vsyncadd [#allocation3], 4294967232 }
  0x35   :  { %615 = dma.done.wait [#allocation5], 1040  }
  0x36   :  { %616 = vsyncadd [#allocation5], 4294966256  ;;  %v622_v0 = vmov 0.0|0.0   ;;  %v623_v1 = vmov 0.0   ;;  %vm624_vm0 = vmmov 0   ;;  %vm153_vm1 = vcmask 64512  }
  0x37   :  { %510 = vmatprep.subr.bf16.mxu0 %v622_v0  ;;  %467 = vmatprep.subr.mxu1 %v623_v1  ;;  %v72_v2 = vld [vmem:[%s766_s3] sm:$0xff]  ;;  %v73_v3 = vld [vmem:[%s766_s3 + $0x8] sm:$0xff]  ;;  %v238_v9 = vld [vmem:[%s768_s5 + $0x10] sm:$0xff]  ;;  %vm79_vm2 = vcmask 1043456   ;;  %vm75_vm3 = vcmask 162816   ;;  %vm251_vm4 = vcmask 523264   ;;  %v414_v50 = vlaneseq }
  0x38   :  { %469 = vmatprep.mubr.msk.f32.mxu1 %vm624_vm0, %v623_v1  ;;  %464 = vmatprep.mubr.msk.f32.mxu0 %vm624_vm0, %v623_v1  ;;  %v70_v4 = vld [vmem:[%s765_s2] sm:$0xff]  ;;  %v511_v5 = vpack.c.bf16 %v73_v3, %v72_v2  ;;  %v237_v8 = vld [vmem:[%s768_s5 + $0x8] sm:$0xff]  ;;  %v239_v11 = vld [vmem:[%s768_s5 + $0x18] sm:$0xff] }
  0x39   :  { %468 = vmatpush3.msra.mxu1 %v70_v4  ;;  %v69_v6 = vld [vmem:[#allocation2] sm:$0xf]  ;;  %v74_v12 = vld [vmem:[%s766_s3 + $0x10] sm:$0xf]  ;;  %v517_v14 = vpack.c.bf16 %v239_v11, %v238_v9  ;;  %v241_v16 = vld [vmem:[%s768_s5 + $0x28] sm:$0xff]  ;;  %v415_v51 = vand.u32 127, %v414_v50 }
  0x3a   :  { %470 = vmatmul.mubr.msk.f32.vlgmr.msra.gmra.mrb[0].mxu1 %vm153_vm1, %v69_v6  ;;  %513 = vmatprep.subr.bf16.mxu1 %v622_v0  ;;  %v236_v7 = vld [vmem:[%s768_s5] sm:$0xff]  ;;  %v242_v18 = vld [vmem:[%s768_s5 + $0x30] sm:$0xff]  ;;  %v243_v19 = vld [vmem:[%s768_s5 + $0x38] sm:$0xff] }
  0x3b   :  { %512 = vmatpush3.bf16.msra.mxu0 %v511_v5  ;;  %v514_v10 = vpack.c.bf16 %v237_v8, %v236_v7  ;;  %488 = vmatprep.mubr.msk.f32.mxu1 %vm624_vm0, %v623_v1  ;;  %v71_v13 = vld [vmem:[%s764_s1] sm:$0xf]  ;;  %v523_v20 = vpack.c.bf16 %v243_v19, %v242_v18  ;;  %v326_v21 = vld [vmem:[#allocation4] sm:$0xff]  ;;  %v327_v22 = vld [vmem:[#allocation4 + $0x8] sm:$0xff]  ;;  %vm416_vm5 = vcmp.eq.s32.totalorder %v415_v51, 0 }
  0x3c   :  { %462 = vmatprep.subr.mxu0 %v623_v1  ;;  %v240_v15 = vld [vmem:[%s768_s5 + $0x20] sm:$0xff]  ;;  %v328_v23 = vld [vmem:[#allocation4 + $0x10] sm:$0xff]  ;;  %v526_v24 = vpack.c.bf16 %v327_v22, %v326_v21  ;;  %v331_v28 = vld [vmem:[#allocation4 + $0x28] sm:$0xff] }
  0x3d   :  { %515 = vmatpush3.bf16.msra.mxu1 %v514_v10  ;;  %v520_v17 = vpack.c.bf16 %v241_v16, %v240_v15  ;;  %v329_v25 = vld [vmem:[#allocation4 + $0x18] sm:$0xff]  ;;  %v330_v27 = vld [vmem:[#allocation4 + $0x20] sm:$0xff]  ;;  %v332_v38 = vld [vmem:[#allocation4 + $0x30] sm:$0xff] }
  0x3e   :  { %516 = vmatprep.subr.bf16.mxu1 %v622_v0  ;;  %v529_v26 = vpack.c.bf16 %v329_v25, %v328_v23  ;;  %v532_v29 = vpack.c.bf16 %v331_v28, %v330_v27  ;;  %v429_v33 = vld [vmem:[%s767_s4] ss:$0 sm:$0xff]  ;;  %v432_v46 = vld [vmem:[#allocation6] ss:$0 sm:$0xff] }
  0x3f   :  { %463 = vmatpush3.msk.msra.mxu0 %vm79_vm2, %v74_v12  ;;  %v333_v39 = vld [vmem:[#allocation4 + $0x38] sm:$0xff] }
  0x40   :  { %465 = vmatmul.mubr.msk.f32.vlgmr.msra.gmra.mrb[0].mxu0 %vm75_vm3, %v71_v13  ;;  %525 = vmatprep.subr.bf16.mxu0 %v622_v0  ;;  %v535_v40 = vpack.c.bf16 %v333_v39, %v332_v38  ;;  %v430_v41 = vld [vmem:[%s769_s6] ss:$0 sm:$0xff] }
  0x41   :  { %518 = vmatpush3.bf16.msra.mxu1 %v517_v14  ;;  %507 = vmatprep.mubr.msk.f32.mxu0 %vm624_vm0, %v623_v1 }
  0x42   :  { %519 = vmatprep.subr.bf16.mxu1 %v622_v0  ;;  %527 = vmatpush3.bf16.msra.mxu0 %v526_v24 }
  0x43   :  { %528 = vmatprep.subr.bf16.mxu0 %v622_v0 }
  0x45   :  { %521 = vmatpush3.bf16.msra.mxu1 %v520_v17 }
  0x46   :  { %522 = vmatprep.subr.bf16.mxu1 %v622_v0  ;;  %530 = vmatpush3.bf16.msra.mxu0 %v529_v26 }
  0x47   :  { %531 = vmatprep.subr.bf16.mxu0 %v622_v0 }
  0x49   :  { %524 = vmatpush3.bf16.msra.mxu1 %v523_v20 }
  0x4a   :  { %533 = vmatpush3.bf16.msra.mxu0 %v532_v29 }
  0x4b   :  { %534 = vmatprep.subr.bf16.mxu0 %v622_v0 }
  0x4e   :  { %536 = vmatpush3.bf16.msra.mxu0 %v535_v40 }
 0x10d   :  { %v223_v30 = vpop.f32.mrb[0].mxu1 }
 0x10e   :  { %v471_v31 = vpop.f32.mrb[1].mxu1 }
 0x113   :  { %v149_v32 = vpop.f32.mrb[0].mxu0 }
 0x114   :  { %v224_v34 = vadd.f32 %v223_v30, %v149_v32  ;;  %v466_v35 = vpop.f32.mrb[1].mxu0 }
 0x116   :  { %v234_v36 = vadd.f32 %v429_v33, %v224_v34 }
 0x118   :  { %v235_v37 = vmax.f32 %v234_v36, 0.0 }
 0x11a   :  { %489 = vmatmul.mubr.msk.f32.vlgmr.msra.gmra.mrb[2].mxu1 %vm251_vm4, %v235_v37 }
 0x1ed   :  { %v321_v42 = vpop.f32.mrb[2].mxu1 }
 0x1ee   :  { %v322_v43 = vadd.f32 %v430_v41, %v321_v42  ;;  %v490_v44 = vpop.f32.mrb[3].mxu1 }
 0x1f0   :  { %v325_v45 = vmax.f32 %v322_v43, 0.0 }
 0x1f2   :  { %508 = vmatmul.mubr.msk.f32.vlgmr.msra.gmra.mrb[2].mxu0 %vm251_vm4, %v325_v45 }
 0x2c5   :  { %v410_v47 = vpop.f32.mrb[2].mxu0 }
 0x2c6   :  { %v411_v48 = vadd.f32 %v432_v46, %v410_v47  ;;  %v509_v49 = vpop.f32.mrb[3].mxu0 }
 0x2c8   :  { %545 = vtanh.f32 %v411_v48 }
 0x2d2   :  { %v546_v52 = vpop.eup %545 }
 0x2d3   :  { %v418_v53 = vsel %vm416_vm5, %v411_v48, %v546_v52 }
 0x2d4   :  { %419 = vst [vmem:[%s772_s9] sm:$0xf] %v418_v53 }
 0x2d5   :  { %424 = vsyncpa [#allocation3], 1 }
 0x2d6   :  { %425 = vsyncpa [#allocation5], 1 }

</bundles_post_ra>
